<compile_context>
chip_gen: v5e
topology: v5e:2x2
jax: 0.10.0
libtpu: 0.0.40
codegen_flags: <defaults>
</compile_context>

<pallas_src>
import functools

import jax
import jax.numpy as jnp
from jax.experimental import pallas as pl
from jax.experimental.pallas import tpu as pltpu


HIDDEN = 128  # fixed by the module's Linear(128, 1)


def _round_up(x, m):
    return (x + m - 1) // m * m


def _trainer_kernel(nodes_ref, dist_ref, wn_ref, wd_ref, b_ref, wlin_ref,
                    blin_ref, label_ref, out_ref):
    """One block of TP pairs.

    nodes_ref : (TP, 2F)    f32   pair-packed node rows  [row 2p || row 2p+1]
    dist_ref  : (TP, 2F)    f32   pair-packed dist rows
    wn_ref    : (2F, 2H)    bf16  block-diag [[Wn,0],[0,Wn]]   (resident)
    wd_ref    : (2F, 2H)    bf16  block-diag [[Wd,0],[0,Wd]]   (resident)
    b_ref     : (1, 2H)     f32   [b || b]                     (resident)
    wlin_ref  : (H, 1)      f32   Linear(128,1) weight column  (resident)
    blin_ref  : (1,)        f32   Linear(128,1) bias (SMEM scalar)
    label_ref : (1, TP)     f32   labels, lane-dense
    out_ref   : (2, TP)     f32   row 0 = logits, row 1 = per-element BCE
    """
    # ---- encoder: two K=2F bf16 MXU matmuls, f32 accumulation.
    #      Output lanes [0:H] = h_even, [H:2H] = h_odd (pairs packed on lanes).
    acc = jnp.dot(nodes_ref[...].astype(jnp.bfloat16), wn_ref[...],
                  preferred_element_type=jnp.float32)
    acc = acc + jnp.dot(dist_ref[...].astype(jnp.bfloat16), wd_ref[...],
                        preferred_element_type=jnp.float32)
    h = jnp.maximum(acc + b_ref[...], 0.0)                       # (TP, 2H) f32

    # ---- Detecter head: vreg-aligned lane slices + VPU multiply, then the
    #      128-wide reduction on the MXU (idle after the encoder matmuls).
    pw = h[:, :HIDDEN] * h[:, HIDDEN:]                           # (TP, H) f32
    logits_col = jnp.dot(pw, wlin_ref[...],
                         preferred_element_type=jnp.float32)     # (TP, 1) f32

    # Tiny (TP,1)->(1,TP) transpose so the store and all loss math are
    # lane-dense.
    x = logits_col.T + blin_ref[0]                               # (1, TP)
    y = label_ref[...]                                           # (1, TP)

    # ---- BCEWithLogitsLoss, per element (mean finished in the wrapper):
    #      max(x,0) - x*y + log1p(exp(-|x|))
    loss = jnp.maximum(x, 0.0) - x * y + jnp.log1p(jnp.exp(-jnp.abs(x)))

    out_ref[...] = jnp.concatenate([x, loss], axis=0)            # (2, TP)


@functools.partial(jax.jit, static_argnames=("tile_pairs",))
def trainer_forward(label, nodes, dist, params, *, tile_pairs=512):
    """label: (N//2,)  nodes: (N, F)  dist: (N, F).  Returns (loss, logits)."""
    w_n, w_d, b_enc, w_lin, b_lin = params
    n, f = nodes.shape
    assert n % 2 == 0
    assert tile_pairs % 128 == 0
    p = n // 2
    two_f = 2 * f

    # ---- tile selection: lane-friendly (multiple of 128); keep >=2 blocks
    #      when the problem allows so v7x can shard across both TensorCores.
    tp = min(tile_pairs, _round_up(p, 128))
    if p >= 256 and pl.cdiv(p, tp) < 2:
        tp = _round_up(pl.cdiv(p, 2), 128)
    num_blocks = pl.cdiv(p, tp)
    p_pad = num_blocks * tp

    # ---- pair-packed views: row p = [row 2p || row 2p+1]  (free reshape).
    nodes2 = nodes.reshape(p, two_f)
    dist2 = dist.reshape(p, two_f)
    label2 = label.astype(jnp.float32).reshape(1, p)
    if p_pad != p:  # ragged tail only; padded pairs are masked out below
        nodes2 = jnp.pad(nodes2, ((0, p_pad - p), (0, 0)))
        dist2 = jnp.pad(dist2, ((0, p_pad - p), (0, 0)))
        label2 = jnp.pad(label2, ((0, 0), (0, p_pad - p)))

    # ---- block-diagonal pair weights (tiny, (2F, 2H) each).
    zn = jnp.zeros_like(w_n)
    wn2 = jnp.concatenate(
        [jnp.concatenate([w_n, zn], axis=1),
         jnp.concatenate([zn, w_n], axis=1)], axis=0).astype(jnp.bfloat16)
    zd = jnp.zeros_like(w_d)
    wd2 = jnp.concatenate(
        [jnp.concatenate([w_d, zd], axis=1),
         jnp.concatenate([zd, w_d], axis=1)], axis=0).astype(jnp.bfloat16)
    b2 = jnp.concatenate([b_enc, b_enc], axis=1).astype(jnp.float32)  # (1, 2H)
    wlin_col = w_lin.reshape(HIDDEN, 1).astype(jnp.float32)
    blin = b_lin.reshape(1).astype(jnp.float32)

    # ---- VMEM budget: 2 inputs x double buffer + resident weights + outputs.
    in_block = tp * two_f * nodes2.dtype.itemsize
    w_bytes = 2 * (two_f * 2 * HIDDEN * 2)          # wn2 + wd2 (bf16)
    vmem_limit = int(min(max(4 * in_block + 4 * w_bytes + (4 << 20), 16 << 20),
                         64 << 20))

    grid_spec = pltpu.PrefetchScalarGridSpec(
        num_scalar_prefetch=0,
        grid=(num_blocks,),
        in_specs=[
            # pipelined pair-packed activations
            pl.BlockSpec((tp, two_f), lambda i: (i, 0)),
            pl.BlockSpec((tp, two_f), lambda i: (i, 0)),
            # resident weights / biases
            pl.BlockSpec((two_f, 2 * HIDDEN), lambda i: (0, 0)),
            pl.BlockSpec((two_f, 2 * HIDDEN), lambda i: (0, 0)),
            pl.BlockSpec((1, 2 * HIDDEN), lambda i: (0, 0)),
            pl.BlockSpec((HIDDEN, 1), lambda i: (0, 0)),
            # scalar head bias in SMEM
            pl.BlockSpec(memory_space=pltpu.MemorySpace.SMEM),
            # per-block labels, lane-dense
            pl.BlockSpec((1, tp), lambda i: (0, i)),
        ],
        out_specs=pl.BlockSpec((2, tp), lambda i: (0, i)),
    )

    out = pl.pallas_call(
        _trainer_kernel,
        out_shape=jax.ShapeDtypeStruct((2, p_pad), jnp.float32),
        grid_spec=grid_spec,
        compiler_params=pltpu.CompilerParams(
            dimension_semantics=("parallel",),
            vmem_limit_bytes=vmem_limit),
    )(nodes2, dist2, wn2, wd2, b2, wlin_col, blin, label2)

    # Padded tail pairs carry garbage logits (relu(b) on zero rows); they are
    # masked out here for both the returned logits and the BCE mean.
    logits = out[0, :p]
    loss = jnp.mean(out[1, :p])
    return loss, logits


def make_params(key, feat):
    """Stand-in encoder + head params."""
    k1, k2, k3, k4, k5 = jax.random.split(key, 5)
    w_n = jax.random.normal(k1, (feat, HIDDEN), jnp.float32) * 0.05
    w_d = jax.random.normal(k2, (feat, HIDDEN), jnp.float32) * 0.05
    b_enc = jax.random.normal(k3, (1, HIDDEN), jnp.float32) * 0.01
    w_lin = jax.random.normal(k4, (1, HIDDEN), jnp.float32) * 0.05
    b_lin = jax.random.normal(k5, (1,), jnp.float32) * 0.01
    return w_n, w_d, b_enc, w_lin, b_lin


def _reference(label, nodes, dist, params):
    """Pure-JAX reference mirroring the PyTorch forward (bf16 encoder matmul)."""
    w_n, w_d, b_enc, w_lin, b_lin = params
    h = (jnp.dot(nodes.astype(jnp.bfloat16), w_n.astype(jnp.bfloat16),
                 preferred_element_type=jnp.float32)
         + jnp.dot(dist.astype(jnp.bfloat16), w_d.astype(jnp.bfloat16),
                   preferred_element_type=jnp.float32))
    hidden = jnp.maximum(h + b_enc, 0.0)
    score = jnp.dot(hidden[0::2] * hidden[1::2], w_lin.reshape(-1)) + b_lin[0]
    y = label.astype(jnp.float32)
    loss = jnp.mean(jnp.maximum(score, 0.0) - score * y
                    + jnp.log1p(jnp.exp(-jnp.abs(score))))
    return loss, score


if __name__ == "__main__":
    # Small deterministic shapes: N=512 rows -> P=256 pairs, F=64 features,
    # hidden=128.  tile selection gives TP=128 -> a 2-block parallel grid.
    key = jax.random.PRNGKey(0)
    k_nodes, k_dist, k_label, k_params = jax.random.split(key, 4)

    N, F = 512, 64
    nodes = jax.random.normal(k_nodes, (N, F), jnp.float32)
    dist = jax.random.normal(k_dist, (N, F), jnp.float32)
    label = jax.random.bernoulli(k_label, 0.5, (N // 2,)).astype(jnp.float32)
    params = make_params(k_params, F)

    loss, logits = trainer_forward(label, nodes, dist, params)
    jax.block_until_ready((loss, logits))

    ref_loss, ref_logits = _reference(label, nodes, dist, params)
    assert jnp.allclose(loss, ref_loss, atol=2e-4, rtol=2e-4), (loss, ref_loss)
    assert jnp.allclose(logits, ref_logits, atol=2e-4, rtol=2e-4)

    # TODO(synk): loss_list bookkeeping and torcheval metrics (F1/precision/
    #             recall/accuracy) are host-side stateful Python; not a kernel.
    print("KERNEL_OK")
</pallas_src>

<mosaic_0001>
module attributes {stable_mosaic.version = 11 : i64} {
  func.func @_trainer_kernel(%arg0: i32, %arg1: memref<128x128xf32, #tpu.memory_space<vmem>>, %arg2: memref<128x128xf32, #tpu.memory_space<vmem>>, %arg3: memref<128x256xbf16, #tpu.memory_space<vmem>>, %arg4: memref<128x256xbf16, #tpu.memory_space<vmem>>, %arg5: memref<1x256xf32, #tpu.memory_space<vmem>>, %arg6: memref<128x1xf32, #tpu.memory_space<vmem>>, %arg7: memref<1xf32, #tpu.memory_space<smem>>, %arg8: memref<1x128xf32, #tpu.memory_space<vmem>>, %arg9: memref<2x128xf32, #tpu.memory_space<vmem>>) attributes {dimension_semantics = [#tpu.dimension_semantics<parallel>], iteration_bounds = array<i64: 2>, scalar_prefetch = 0 : i64, scratch_operands = 0 : i64, tpu.core_type = #tpu.core_type<tc>, window_params = [{transform_indices = @transform_0, window_bounds = array<i64: 128, 128>}, {transform_indices = @transform_1, window_bounds = array<i64: 128, 128>}, {pipeline_mode = #tpu.pipeline_mode<synchronous>, transform_indices = @transform_2, window_bounds = array<i64: 128, 256>}, {pipeline_mode = #tpu.pipeline_mode<synchronous>, transform_indices = @transform_3, window_bounds = array<i64: 128, 256>}, {pipeline_mode = #tpu.pipeline_mode<synchronous>, transform_indices = @transform_4, window_bounds = array<i64: 1, 256>}, {pipeline_mode = #tpu.pipeline_mode<synchronous>, transform_indices = @transform_5, window_bounds = array<i64: 128, 1>}, {transform_indices = @transform_6, window_bounds = array<i64: 1>}, {transform_indices = @transform_7, window_bounds = array<i64: 1, 128>}, {transform_indices = @transform_8, window_bounds = array<i64: 2, 128>}]} {
    %c0 = arith.constant 0 : index
    %c0_0 = arith.constant 0 : index
    %0 = vector.load %arg1[%c0, %c0_0] : memref<128x128xf32, #tpu.memory_space<vmem>>, vector<128x128xf32>
    %1 = arith.truncf %0 : vector<128x128xf32> to vector<128x128xbf16>
    %c0_1 = arith.constant 0 : index
    %c0_2 = arith.constant 0 : index
    %2 = vector.load %arg3[%c0_1, %c0_2] : memref<128x256xbf16, #tpu.memory_space<vmem>>, vector<128x256xbf16>
    %cst = arith.constant dense<0.000000e+00> : vector<128x256xf32>
    %3 = tpu.matmul %1, %2, %cst {dimension_numbers = #tpu.dot_dimension_numbers<[1], [0], [0], [1], [0, 0, 1, 1], [], []>} : vector<128x128xbf16>, vector<128x256xbf16>, vector<128x256xf32> -> vector<128x256xf32>
    %c0_3 = arith.constant 0 : index
    %c0_4 = arith.constant 0 : index
    %4 = vector.load %arg2[%c0_3, %c0_4] : memref<128x128xf32, #tpu.memory_space<vmem>>, vector<128x128xf32>
    %5 = arith.truncf %4 : vector<128x128xf32> to vector<128x128xbf16>
    %c0_5 = arith.constant 0 : index
    %c0_6 = arith.constant 0 : index
    %6 = vector.load %arg4[%c0_5, %c0_6] : memref<128x256xbf16, #tpu.memory_space<vmem>>, vector<128x256xbf16>
    %cst_7 = arith.constant dense<0.000000e+00> : vector<128x256xf32>
    %7 = tpu.matmul %5, %6, %cst_7 {dimension_numbers = #tpu.dot_dimension_numbers<[1], [0], [0], [1], [0, 0, 1, 1], [], []>} : vector<128x128xbf16>, vector<128x256xbf16>, vector<128x256xf32> -> vector<128x256xf32>
    %8 = arith.addf %3, %7 : vector<128x256xf32>
    %c0_8 = arith.constant 0 : index
    %c0_9 = arith.constant 0 : index
    %9 = vector.load %arg5[%c0_8, %c0_9] : memref<1x256xf32, #tpu.memory_space<vmem>>, vector<1x256xf32>
    %10 = vector.broadcast %9 : vector<1x256xf32> to vector<128x256xf32>
    %11 = arith.addf %8, %10 : vector<128x256xf32>
    %cst_10 = arith.constant 0.000000e+00 : f32
    %12 = vector.broadcast %cst_10 : f32 to vector<128x256xf32>
    %13 = arith.maximumf %11, %12 : vector<128x256xf32>
    %14 = vector.extract_strided_slice %13 {offsets = [0, 0], sizes = [128, 128], strides = [1, 1]} : vector<128x256xf32> to vector<128x128xf32>
    %15 = vector.extract_strided_slice %13 {offsets = [0, 128], sizes = [128, 128], strides = [1, 1]} : vector<128x256xf32> to vector<128x128xf32>
    %16 = arith.mulf %14, %15 : vector<128x128xf32>
    %c0_11 = arith.constant 0 : index
    %c0_12 = arith.constant 0 : index
    %17 = vector.load %arg6[%c0_11, %c0_12] : memref<128x1xf32, #tpu.memory_space<vmem>>, vector<128x1xf32>
    %cst_13 = arith.constant dense<0.000000e+00> : vector<128x1xf32>
    %18 = tpu.matmul %16, %17, %cst_13 {dimension_numbers = #tpu.dot_dimension_numbers<[1], [0], [0], [1], [0, 0, 1, 1], [], []>} : vector<128x128xf32>, vector<128x1xf32>, vector<128x1xf32> -> vector<128x1xf32>
    %19 = tpu.transpose %18, [1, 0] : vector<128x1xf32> -> vector<1x128xf32>
    %c0_14 = arith.constant 0 : index
    %20 = memref.load %arg7[%c0_14] : memref<1xf32, #tpu.memory_space<smem>>
    %21 = vector.broadcast %20 : f32 to vector<1x128xf32>
    %22 = arith.addf %19, %21 : vector<1x128xf32>
    %c0_15 = arith.constant 0 : index
    %c0_16 = arith.constant 0 : index
    %23 = vector.load %arg8[%c0_15, %c0_16] : memref<1x128xf32, #tpu.memory_space<vmem>>, vector<1x128xf32>
    %cst_17 = arith.constant 0.000000e+00 : f32
    %24 = vector.broadcast %cst_17 : f32 to vector<1x128xf32>
    %25 = arith.maximumf %22, %24 : vector<1x128xf32>
    %26 = arith.mulf %22, %23 : vector<1x128xf32>
    %27 = arith.subf %25, %26 : vector<1x128xf32>
    %28 = math.absf %22 : vector<1x128xf32>
    %cst_18 = arith.constant 0.000000e+00 : f32
    %29 = vector.broadcast %cst_18 : f32 to vector<1x128xf32>
    %30 = arith.subf %29, %28 : vector<1x128xf32>
    %31 = math.exp %30 : vector<1x128xf32>
    %32 = math.log1p %31 : vector<1x128xf32>
    %33 = arith.addf %27, %32 : vector<1x128xf32>
    %34 = tpu.concatenate %22, %33 in 0 : vector<1x128xf32>, vector<1x128xf32> -> vector<2x128xf32>
    %c0_19 = arith.constant 0 : index
    %c0_20 = arith.constant 0 : index
    %35 = vector.load %arg9[%c0_19, %c0_20] : memref<2x128xf32, #tpu.memory_space<vmem>>, vector<2x128xf32>
    tpu.vector_store %arg9[%c0_19, %c0_20], %34 {strides = array<i32>} : memref<2x128xf32, #tpu.memory_space<vmem>>, vector<2x128xf32>,
    return
  }
  func.func @transform_0(%arg0: i32) -> (i32, i32) {
    %c0_i32 = arith.constant 0 : i32
    %c0_i32_0 = arith.constant 0 : i32
    return %arg0, %c0_i32 : i32, i32
  }
  func.func @transform_1(%arg0: i32) -> (i32, i32) {
    %c0_i32 = arith.constant 0 : i32
    %c0_i32_0 = arith.constant 0 : i32
    return %arg0, %c0_i32 : i32, i32
  }
  func.func @transform_2(%arg0: i32) -> (i32, i32) {
    %c0_i32 = arith.constant 0 : i32
    %c0_i32_0 = arith.constant 0 : i32
    %c0_i32_1 = arith.constant 0 : i32
    return %c0_i32, %c0_i32_0 : i32, i32
  }
  func.func @transform_3(%arg0: i32) -> (i32, i32) {
    %c0_i32 = arith.constant 0 : i32
    %c0_i32_0 = arith.constant 0 : i32
    %c0_i32_1 = arith.constant 0 : i32
    return %c0_i32, %c0_i32_0 : i32, i32
  }
  func.func @transform_4(%arg0: i32) -> (i32, i32) {
    %c0_i32 = arith.constant 0 : i32
    %c0_i32_0 = arith.constant 0 : i32
    %c0_i32_1 = arith.constant 0 : i32
    return %c0_i32, %c0_i32_0 : i32, i32
  }
  func.func @transform_5(%arg0: i32) -> (i32, i32) {
    %c0_i32 = arith.constant 0 : i32
    %c0_i32_0 = arith.constant 0 : i32
    %c0_i32_1 = arith.constant 0 : i32
    return %c0_i32, %c0_i32_0 : i32, i32
  }
  func.func @transform_6(%arg0: i32) -> i32 {
    %c0_i32 = arith.constant 0 : i32
    %c0_i32_0 = arith.constant 0 : i32
    return %c0_i32 : i32
  }
  func.func @transform_7(%arg0: i32) -> (i32, i32) {
    %c0_i32 = arith.constant 0 : i32
    %c0_i32_0 = arith.constant 0 : i32
    return %c0_i32, %arg0 : i32, i32
  }
  func.func @transform_8(%arg0: i32) -> (i32, i32) {
    %c0_i32 = arith.constant 0 : i32
    %c0_i32_0 = arith.constant 0 : i32
    return %c0_i32, %arg0 : i32, i32
  }
}

</mosaic_0001>

<bundles_post_ra>
// kernel: trainer_forward.1
= control target key start
LH: loop header
LB: loop body
LE: loop exit
PB: predicated region body
PF: predicated region fallthrough
CT: control target
= control target key end

     0   :  { %s1343_s29 = smov 0   ;;  %s1757_s0 = inlined_call_operand.vmem [shape: f32[256,128], index: 0, kind: input, shape index: {}]   ;;  %s1758_s1 = inlined_call_operand.vmem [shape: f32[256,128], index: 1, kind: input, shape index: {}]   ;;  %s1759_s2 = inlined_call_operand.vmem [shape: bf16[128,256], index: 2, kind: input, shape index: {}]   ;;  %s1760_s3 = inlined_call_operand.vmem [shape: bf16[128,256], index: 3, kind: input, shape index: {}]   ;;  %s1761_s4 = inlined_call_operand.vmem [shape: f32[1,256], index: 4, kind: input, shape index: {}]   ;;  %s1762_s5 = inlined_call_operand.vmem [shape: f32[128,1], index: 5, kind: input, shape index: {}]   ;;  %s1763_s6 = inlined_call_operand.<no memory space> [shape: f32[1], index: 6, kind: input, shape index: {}]   ;;  %s1764_s7 = inlined_call_operand.vmem [shape: f32[1,256], index: 7, kind: input, shape index: {}]   ;;  %s1765_s8 = inlined_call_operand.vmem [shape: f32[2,256], index: 8, kind: output, shape index: {}]  }
   0x1   :  { %13 = sst [smem:[#allocation2]] %s1763_s6 }
   0x2 LB: > { %s1349_s30 = sadd.s32 4294967295, %s1293_s29   ;;  %p1083_p0 = scmp.ge.s32.totalorder %s1293_s29, 1  ;;  %s1293_s29 = sphi %s1343_s29, %s19_s29  }
   0x3   : > { %p283_p1 = scmp.lt.s32.totalorder %s1293_s29, 3 }
   0x5   : > { %p284_p2 = pnand %p1083_p0, %p283_p1 }
   0x6   : > { %s1084_s24 = sshll.u32 (!%p284_p2), %s1349_s30, 4  ;;  %s978_s25 = sld [smem:[#allocation2]] (!%p284_p2) }
   0x7   : > { %287 = sbr.rel (%p284_p2) target bundleno = 545 (0x221), region = 52  ;;  %p325_p3 = scmp.lt.s32.totalorder (!%p284_p2), %s1084_s24, 31 }
   0x8   : > { %p336_p4 = scmp.lt.s32.totalorder (!%p284_p2), %s1349_s30, 1 }
   0xc   : > { %v1147_v0 = vld [vmem:[%s1760_s3 + $0x70] sm:$0xf]  ;;  %v1250_v1 = vld [vmem:[%s1760_s3 + $0x74] sm:$0xf0]  ;;  %v1139_v2 = vld [vmem:[%s1760_s3 + $0x60] sm:$0xf] }
   0xd   : > { %v1148_v3 = vor.u32 %v1250_v1, %v1147_v0  ;;  %v1248_v4 = vld [vmem:[%s1760_s3 + $0x64] sm:$0xf0]  ;;  %v1131_v6 = vld [vmem:[%s1760_s3 + $0x50] sm:$0xf]  ;;  %v1246_v7 = vld [vmem:[%s1760_s3 + $0x54] sm:$0xf0] }
   0xe   : > { %v1140_v5 = vor.u32 %v1248_v4, %v1139_v2  ;;  %v1132_v8 = vor.u32 %v1246_v7, %v1131_v6  ;;  %v1123_v9 = vld [vmem:[%s1760_s3 + $0x40] sm:$0xf]  ;;  %v1244_v10 = vld [vmem:[%s1760_s3 + $0x44] sm:$0xf0]  ;;  %v1115_v12 = vld [vmem:[%s1760_s3 + $0x30] sm:$0xf] }
   0xf   : > { %1251 = vmatpush.bf16.msra.mxu1 %v1148_v3  ;;  %1252 = vmatpush.bf16.msra.mxu2 %v1148_v3  ;;  %v1124_v11 = vor.u32 %v1244_v10, %v1123_v9  ;;  %v1242_v13 = vld [vmem:[%s1760_s3 + $0x34] sm:$0xf0]  ;;  %v1107_v15 = vld [vmem:[%s1760_s3 + $0x20] sm:$0xf]  ;;  %v1240_v16 = vld [vmem:[%s1760_s3 + $0x24] sm:$0xf0] }
  0x10   : > { %1253 = vmatpush.bf16.msra.mxu3 %v1148_v3  ;;  %503 = vmatpush.bf16.msra.mxu0 %v1148_v3  ;;  %v1116_v14 = vor.u32 %v1242_v13, %v1115_v12  ;;  %s1767_s24 = smov (!%p325_p3, %s1084_s24), 31  ;;  %v1108_v17 = vor.u32 %v1240_v16, %v1107_v15  ;;  %v1099_v18 = vld [vmem:[%s1760_s3 + $0x10] sm:$0xf]  ;;  %v1238_v19 = vld [vmem:[%s1760_s3 + $0x14] sm:$0xf0]  ;;  %s1769_s30 = smov (!%p336_p4, %s1349_s30), 1 }
  0x11   : > { %s1085_s16 = sshll.u32 %s1767_s24, 3  ;;  %v1100_v20 = vor.u32 %v1238_v19, %v1099_v18  ;;  %v1091_v21 = vld [vmem:[%s1760_s3] sm:$0xf]  ;;  %v1236_v22 = vld [vmem:[%s1760_s3 + $0x4] sm:$0xf0]  ;;  %s338_s28 = scalar_lea.vmem %s1764_s7, %s1769_s30  ;;  %vm1002_vm1 = vcmask 1040384  }
  0x12   : > { %s1404_s19 = scalar_lea.vmem %s1758_s1, %s1085_s16  ;;  %v1211_v23 = vld [vmem:[%s1759_s2 + $0x70] sm:$0xf]  ;;  %v1234_v24 = vld [vmem:[%s1759_s2 + $0x74] sm:$0xf0]  ;;  %v1233_v25 = vld [vmem:[%s1759_s2 + $0x74] sm:$0xf]  ;;  %v1092_v30 = vor.u32 %v1236_v22, %v1091_v21  ;;  %s1598_s6 = scalar_lea.vmem %s1757_s0, %s1085_s16 }
  0x13   : > { %1254 = vmatpush.bf16.msra.mxu1 %v1140_v5  ;;  %1255 = vmatpush.bf16.msra.mxu2 %v1140_v5  ;;  %v1213_v26 = vld [vmem:[%s1759_s2 + $0x78] sm:$0xf0]  ;;  %v387_v27 = vld [vmem:[%s1404_s19 + $0x20] sm:$0xff]  ;;  %v1249_v28 = vld [vmem:[%s1760_s3 + $0x74] sm:$0xf]  ;;  %v1212_v36 = vor.u32 %v1234_v24, %v1211_v23  ;;  %s1088_s9 = sshll.u32 %s1769_s30, 1 }
  0x14   : > { %1256 = vmatpush.bf16.msra.mxu3 %v1140_v5  ;;  %504 = vmatpush.bf16.msra.mxu0 %v1140_v5  ;;  %v1149_v29 = vld [vmem:[%s1760_s3 + $0x78] sm:$0xf0]  ;;  %v388_v31 = vld [vmem:[%s1404_s19 + $0x28] sm:$0xff]  ;;  %v391_v32 = vld [vmem:[%s1404_s19 + $0x40] sm:$0xff]  ;;  %v1216_v37 = vor.u32 %v1233_v25, %v1213_v26  ;;  %s342_s24 = scalar_lea.vmem %s1765_s8, %s1088_s9 }
  0x15   : > { %v392_v33 = vld [vmem:[%s1404_s19 + $0x48] sm:$0xff]  ;;  %v395_v34 = vld [vmem:[%s1404_s19 + $0x60] sm:$0xff]  ;;  %v1152_v38 = vor.u32 %v1249_v28, %v1149_v29  ;;  %v1445_v42 = vpack.c.bf16 %v388_v31, %v387_v27  ;;  %v1195_v53 = vld [vmem:[%s1759_s2 + $0x50] sm:$0xf] }
  0x16   : > { %v396_v35 = vld [vmem:[%s1404_s19 + $0x68] sm:$0xff]  ;;  %v1203_v39 = vld [vmem:[%s1759_s2 + $0x60] sm:$0xf]  ;;  %v1231_v41 = vld [vmem:[%s1759_s2 + $0x64] sm:$0xf]  ;;  %v1447_v43 = vpack.c.bf16 %v392_v33, %v391_v32 }
  0x17   : > { %1257 = vmatpush.bf16.msra.mxu1 %v1132_v8  ;;  %1258 = vmatpush.bf16.msra.mxu2 %v1132_v8  ;;  %v1232_v40 = vld [vmem:[%s1759_s2 + $0x64] sm:$0xf0]  ;;  %v1205_v44 = vld [vmem:[%s1759_s2 + $0x68] sm:$0xf0]  ;;  %v1247_v45 = vld [vmem:[%s1760_s3 + $0x64] sm:$0xf]  ;;  %v1458_v47 = vpack.c.bf16 %v396_v35, %v395_v34 }
  0x18   : > { %1259 = vmatpush.bf16.msra.mxu3 %v1132_v8  ;;  %505 = vmatpush.bf16.msra.mxu0 %v1132_v8  ;;  %v1141_v46 = vld [vmem:[%s1760_s3 + $0x68] sm:$0xf0]  ;;  %v383_v48 = vld [vmem:[%s1404_s19] sm:$0xff]  ;;  %v1204_v50 = vor.u32 %v1232_v40, %v1203_v39  ;;  %v1208_v51 = vor.u32 %v1231_v41, %v1205_v44  ;;  %v1230_v54 = vld [vmem:[%s1759_s2 + $0x54] sm:$0xf0] }
  0x19   : > { %v384_v49 = vld [vmem:[%s1404_s19 + $0x8] sm:$0xff]  ;;  %v1144_v52 = vor.u32 %v1247_v45, %v1141_v46  ;;  %v1229_v55 = vld [vmem:[%s1759_s2 + $0x54] sm:$0xf]  ;;  %v1197_v56 = vld [vmem:[%s1759_s2 + $0x58] sm:$0xf0]  ;;  %v1196_v60 = vor.u32 %v1230_v54, %v1195_v53 }
  0x1a   : > { %v1245_v57 = vld [vmem:[%s1760_s3 + $0x54] sm:$0xf]  ;;  %v1133_v58 = vld [vmem:[%s1760_s3 + $0x58] sm:$0xf0]  ;;  %v1482_v59 = vpack.c.bf16 %v384_v49, %v383_v48  ;;  %v1200_v61 = vor.u32 %v1229_v55, %v1197_v56  ;;  %v1187_v63 = vld [vmem:[%s1759_s2 + $0x40] sm:$0xf] }
  0x1b   : > { %1260 = vmatpush.bf16.msra.mxu1 %v1124_v11  ;;  %1261 = vmatpush.bf16.msra.mxu2 %v1124_v11  ;;  %v1136_v62 = vor.u32 %v1245_v57, %v1133_v58  ;;  %v1228_v0 = vld [vmem:[%s1759_s2 + $0x44] sm:$0xf0]  ;;  %v1227_v1 = vld [vmem:[%s1759_s2 + $0x44] sm:$0xf]  ;;  %v1189_v2 = vld [vmem:[%s1759_s2 + $0x48] sm:$0xf0] }
  0x1c   : > { %1262 = vmatpush.bf16.msra.mxu3 %v1124_v11  ;;  %506 = vmatpush.bf16.msra.mxu0 %v1124_v11  ;;  %v1243_v3 = vld [vmem:[%s1760_s3 + $0x44] sm:$0xf]  ;;  %v1125_v4 = vld [vmem:[%s1760_s3 + $0x48] sm:$0xf0]  ;;  %v1188_v5 = vor.u32 %v1228_v0, %v1187_v63  ;;  %v1192_v6 = vor.u32 %v1227_v1, %v1189_v2  ;;  %v389_v8 = vld [vmem:[%s1404_s19 + $0x30] sm:$0xff] }
  0x1d   : > { %v1128_v7 = vor.u32 %v1243_v3, %v1125_v4  ;;  %v1179_v9 = vld [vmem:[%s1759_s2 + $0x30] sm:$0xf]  ;;  %v1226_v10 = vld [vmem:[%s1759_s2 + $0x34] sm:$0xf0]  ;;  %v1225_v11 = vld [vmem:[%s1759_s2 + $0x34] sm:$0xf] }
  0x1e   : > { %v1181_v12 = vld [vmem:[%s1759_s2 + $0x38] sm:$0xf0]  ;;  %v1241_v13 = vld [vmem:[%s1760_s3 + $0x34] sm:$0xf]  ;;  %v1171_v23 = vld [vmem:[%s1759_s2 + $0x20] sm:$0xf] }
  0x1f   : > { %1263 = vmatpush.bf16.msra.mxu1 %v1116_v14  ;;  %1264 = vmatpush.bf16.msra.mxu2 %v1116_v14  ;;  %v390_v15 = vld [vmem:[%s1404_s19 + $0x38] sm:$0xff]  ;;  %v393_v16 = vld [vmem:[%s1404_s19 + $0x50] sm:$0xff]  ;;  %v1184_v21 = vor.u32 %v1225_v11, %v1181_v12  ;;  %v1224_v24 = vld [vmem:[%s1759_s2 + $0x24] sm:$0xf0] }
  0x20   : > { %1265 = vmatpush.bf16.msra.mxu3 %v1116_v14  ;;  %507 = vmatpush.bf16.msra.mxu0 %v1116_v14  ;;  %v1117_v14 = vld [vmem:[%s1760_s3 + $0x38] sm:$0xf0]  ;;  %v397_v18 = vld [vmem:[%s1404_s19 + $0x70] sm:$0xff]  ;;  %v1223_v25 = vld [vmem:[%s1759_s2 + $0x24] sm:$0xf]  ;;  %v1537_v26 = vpack.c.bf16 %v390_v15, %v389_v8  ;;  %v1172_v34 = vor.u32 %v1224_v24, %v1171_v23 }
  0x21   : > { %v398_v19 = vld [vmem:[%s1404_s19 + $0x78] sm:$0xff]  ;;  %v1120_v22 = vor.u32 %v1241_v13, %v1117_v14  ;;  %v1173_v28 = vld [vmem:[%s1759_s2 + $0x28] sm:$0xf0]  ;;  %v1239_v29 = vld [vmem:[%s1760_s3 + $0x24] sm:$0xf] }
  0x22   : > { %v1550_v31 = vpack.c.bf16 %v398_v19, %v397_v18  ;;  %v385_v32 = vld [vmem:[%s1404_s19 + $0x10] sm:$0xff]  ;;  %v386_v33 = vld [vmem:[%s1404_s19 + $0x18] sm:$0xff]  ;;  %v1176_v35 = vor.u32 %v1223_v25, %v1173_v28  ;;  %v1157_v53 = vld [vmem:[%s1759_s2 + $0x8] sm:$0xf0] }
  0x23   : > { %1266 = vmatpush.bf16.msra.mxu1 %v1108_v17  ;;  %1267 = vmatpush.bf16.msra.mxu2 %v1108_v17  ;;  %v1221_v39 = vld [vmem:[%s1759_s2 + $0x14] sm:$0xf]  ;;  %v1165_v40 = vld [vmem:[%s1759_s2 + $0x18] sm:$0xf0]  ;;  %v400_v45 = vpack.c.bf16 %v386_v33, %v385_v32  ;;  %v1235_v54 = vld [vmem:[%s1760_s3 + $0x4] sm:$0xf] }
  0x24   : > { %1268 = vmatpush.bf16.msra.mxu3 %v1108_v17  ;;  %508 = vmatpush.bf16.msra.mxu0 %v1108_v17  ;;  %v394_v17 = vld [vmem:[%s1404_s19 + $0x58] sm:$0xff]  ;;  %v1237_v41 = vld [vmem:[%s1760_s3 + $0x14] sm:$0xf]  ;;  %v1168_v48 = vor.u32 %v1221_v39, %v1165_v40  ;;  %v1093_v55 = vld [vmem:[%s1760_s3 + $0x8] sm:$0xf0] }
  0x25   : > { %v1539_v27 = vpack.c.bf16 %v394_v17, %v393_v16  ;;  %v1101_v44 = vld [vmem:[%s1760_s3 + $0x18] sm:$0xf0]  ;;  %v1096_v58 = vor.u32 %v1235_v54, %v1093_v55  ;;  %v345_v63 = vld [vmem:[%s1598_s6 + $0x10] sm:$0xff]  ;;  %v347_v2 = vld [vmem:[%s1598_s6 + $0x20] sm:$0xff] }
  0x26   : > { %v1104_v49 = vor.u32 %v1237_v41, %v1101_v44  ;;  %v346_v0 = vld [vmem:[%s1598_s6 + $0x18] sm:$0xff]  ;;  %v348_v3 = vld [vmem:[%s1598_s6 + $0x28] sm:$0xff]  ;;  %v879_v13 = vld [vmem:[%s1762_s5 + $0x70] sm:$0xff] }
  0x27   : > { %1269 = vmatpush.bf16.msra.mxu1 %v1100_v20  ;;  %1270 = vmatpush.bf16.msra.mxu2 %v1100_v20  ;;  %v360_v1 = vpack.c.bf16 %v346_v0, %v345_v63  ;;  %v361_v4 = vpack.c.bf16 %v348_v3, %v347_v2  ;;  %v352_v8 = vld [vmem:[%s1598_s6 + $0x48] sm:$0xff]  ;;  %v354_v11 = vld [vmem:[%s1598_s6 + $0x58] sm:$0xff]  ;;  %v877_v14 = vld [vmem:[%s1762_s5 + $0x60] sm:$0xff] }
  0x28   : > { %1271 = vmatpush.bf16.msra.mxu3 %v1100_v20  ;;  %509 = vmatpush.bf16.msra.mxu0 %v1100_v20  ;;  %v1180_v20 = vor.u32 %v1226_v10, %v1179_v9  ;;  %v353_v10 = vld [vmem:[%s1598_s6 + $0x50] sm:$0xff]  ;;  %v880_v12 = vld [vmem:[%s1762_s5 + $0x78] sm:$0xff]  ;;  %v874_v17 = vld [vmem:[%s1762_s5 + $0x48] sm:$0xff] }
  0x29   : > { %v876_v15 = vld [vmem:[%s1762_s5 + $0x58] sm:$0xff]  ;;  %v875_v16 = vld [vmem:[%s1762_s5 + $0x50] sm:$0xff]  ;;  %v355_v18 = vld [vmem:[%s1598_s6 + $0x60] sm:$0xff] }
  0x2a   : > { %v356_v19 = vld [vmem:[%s1598_s6 + $0x68] sm:$0xff]  ;;  %v871_v24 = vld [vmem:[%s1762_s5 + $0x30] sm:$0xff]  ;;  %v358_v33 = vld [vmem:[%s1598_s6 + $0x78] sm:$0xff] }
  0x2b   : > { %1272 = vmatpush.bf16.msra.mxu1 %v1092_v30  ;;  %1273 = vmatpush.bf16.msra.mxu2 %v1092_v30  ;;  %v870_v25 = vld [vmem:[%s1762_s5 + $0x28] sm:$0xff]  ;;  %v357_v32 = vld [vmem:[%s1598_s6 + $0x70] sm:$0xff] }
  0x2c   : > { %1274 = vmatpush.bf16.msra.mxu3 %v1092_v30  ;;  %510 = vmatpush.bf16.msra.mxu0 %v1092_v30  ;;  %v1109_v30 = vld [vmem:[%s1760_s3 + $0x28] sm:$0xf0] }
  0x2e   : > { %521 = vmatmul.bf16.vlgmr.msra.gmra.mxu1 %v1445_v42  ;;  %531 = vmatmul.bf16.vlgmr.msra.gmra.mxu2 %v1447_v43 }
  0x2f   : > { %681 = vmatpush.bf16.msrb.mxu2 %v1212_v36  ;;  %552 = vmatpush.bf16.msrb.mxu1 %v1152_v38  ;;  %v1112_v36 = vor.u32 %v1239_v29, %v1109_v30  ;;  %v1222_v38 = vld [vmem:[%s1759_s2 + $0x14] sm:$0xf0]  ;;  %v867_v30 = vld [vmem:[%s1762_s5 + $0x10] sm:$0xff] }
  0x30   : > { %730 = vmatpush.bf16.msrb.mxu3 %v1216_v37  ;;  %511 = vmatmul.bf16.vlgmr.msra.gmra.mxu0 %v1482_v59  ;;  %v1163_v37 = vld [vmem:[%s1759_s2 + $0x10] sm:$0xf] }
  0x31   : > { %541 = vmatmul.bf16.vlgmr.msra.gmra.mxu3 %v1458_v47  ;;  %v1164_v46 = vor.u32 %v1222_v38, %v1163_v37  ;;  %881 = vmatpush.msrb.mxu0 %v880_v12  ;;  %v366_v38 = vpack.c.bf16 %v358_v33, %v357_v32 }
  0x33   : > { %682 = vmatpush.bf16.msrb.mxu2 %v1204_v50  ;;  %553 = vmatpush.bf16.msrb.mxu1 %v1144_v52  ;;  %v1155_v50 = vld [vmem:[%s1759_s2] sm:$0xf]  ;;  %v1219_v52 = vld [vmem:[%s1759_s2 + $0x4] sm:$0xf] }
  0x34   : > { %731 = vmatpush.bf16.msrb.mxu3 %v1208_v51  ;;  %v1220_v51 = vld [vmem:[%s1759_s2 + $0x4] sm:$0xf0]  ;;  %v1160_v57 = vor.u32 %v1219_v52, %v1157_v53  ;;  %882 = vmatpush.msrb.mxu0 %v879_v13 }
  0x35   : > { %v1156_v56 = vor.u32 %v1220_v51, %v1155_v50  ;;  %v779_v50 = vld [vmem:[%s1761_s4] sm:$0x3] }
  0x36   : > { %v1698_v51 = vperm.slane %v779_v50, 0  ;;  %v1700_v52 = vperm.slane %v779_v50, 1 }
  0x37   : > { %683 = vmatpush.bf16.msrb.mxu2 %v1196_v60  ;;  %554 = vmatpush.bf16.msrb.mxu1 %v1136_v62  ;;  %v343_v60 = vld [vmem:[%s1598_s6] sm:$0xff] }
  0x38   : > { %732 = vmatpush.bf16.msrb.mxu3 %v1200_v61  ;;  %v344_v61 = vld [vmem:[%s1598_s6 + $0x8] sm:$0xff] }
  0x39   : > { %v359_v62 = vpack.c.bf16 %v344_v61, %v343_v60 }
  0x3b   : > { %684 = vmatpush.bf16.msrb.mxu2 %v1188_v5  ;;  %555 = vmatpush.bf16.msrb.mxu1 %v1128_v7  ;;  %v350_v5 = vld [vmem:[%s1598_s6 + $0x38] sm:$0xff]  ;;  %v351_v7 = vld [vmem:[%s1598_s6 + $0x40] sm:$0xff] }
  0x3c   : > { %733 = vmatpush.bf16.msrb.mxu3 %v1192_v6  ;;  %v363_v9 = vpack.c.bf16 %v352_v8, %v351_v7 }
  0x3e   : > { %526 = vmatmul.bf16.gmra.mxu1 %v1537_v26  ;;  %536 = vmatmul.bf16.gmra.mxu2 %v1539_v27 }
  0x3f   : > { %685 = vmatpush.bf16.msrb.mxu2 %v1180_v20  ;;  %556 = vmatpush.bf16.msrb.mxu1 %v1120_v22  ;;  %v873_v20 = vld [vmem:[%s1762_s5 + $0x40] sm:$0xff]  ;;  %v872_v22 = vld [vmem:[%s1762_s5 + $0x38] sm:$0xff] }
  0x40   : > { %734 = vmatpush.bf16.msrb.mxu3 %v1184_v21  ;;  %516 = vmatmul.bf16.gmra.mxu0 %v400_v45  ;;  %v365_v21 = vpack.c.bf16 %v356_v19, %v355_v18 }
  0x41   : > { %546 = vmatmul.bf16.gmra.mxu3 %v1550_v31 }
  0x43   : > { %686 = vmatpush.bf16.msrb.mxu2 %v1172_v34  ;;  %557 = vmatpush.bf16.msrb.mxu1 %v1112_v36  ;;  %v866_v34 = vld [vmem:[%s1762_s5 + $0x8] sm:$0xff] }
  0x44   : > { %735 = vmatpush.bf16.msrb.mxu3 %v1176_v35  ;;  %v865_v35 = vld [vmem:[%s1762_s5] sm:$0xff] }
  0x47   : > { %687 = vmatpush.bf16.msrb.mxu2 %v1164_v46  ;;  %558 = vmatpush.bf16.msrb.mxu1 %v1104_v49 }
  0x48   : > { %736 = vmatpush.bf16.msrb.mxu3 %v1168_v48 }
  0x4b   : > { %688 = vmatpush.bf16.msrb.mxu2 %v1156_v56  ;;  %559 = vmatpush.bf16.msrb.mxu1 %v1096_v58 }
  0x4c   : > { %737 = vmatpush.bf16.msrb.mxu3 %v1160_v57 }
  0x4e   : > { %560 = vmatmul.bf16.vlgmr.msrb.gmra.mxu1 %v1482_v59  ;;  %689 = vmatmul.bf16.vlgmr.msrb.gmra.mxu2 %v359_v62  ;;  %v349_v59 = vld [vmem:[%s1598_s6 + $0x30] sm:$0xff] }
  0x4f   : > { %v362_v6 = vpack.c.bf16 %v350_v5, %v349_v59 }
  0x51   : > { %738 = vmatmul.bf16.vlgmr.msrb.gmra.mxu3 %v359_v62 }
  0x5e   : > { %565 = vmatmul.bf16.gmra.mxu1 %v400_v45  ;;  %694 = vmatmul.bf16.gmra.mxu2 %v360_v1 }
  0x61   : > { %743 = vmatmul.bf16.gmra.mxu3 %v360_v1 }
  0x6e   : > { %570 = vmatmul.bf16.gmra.mxu1 %v1445_v42  ;;  %699 = vmatmul.bf16.gmra.mxu2 %v361_v4  ;;  %v364_v42 = vpack.c.bf16 %v354_v11, %v353_v10 }
  0x71   : > { %748 = vmatmul.bf16.gmra.mxu3 %v361_v4 }
  0x7e   : > { %575 = vmatmul.bf16.gmra.mxu1 %v1537_v26  ;;  %704 = vmatmul.bf16.gmra.mxu2 %v362_v6  ;;  %v869_v26 = vld [vmem:[%s1762_s5 + $0x20] sm:$0xff] }
  0x81   : > { %753 = vmatmul.bf16.gmra.mxu3 %v362_v6 }
  0x8e   : > { %580 = vmatmul.bf16.gmra.mxu1 %v1447_v43  ;;  %709 = vmatmul.bf16.gmra.mxu2 %v363_v9  ;;  %v878_v43 = vld [vmem:[%s1762_s5 + $0x68] sm:$0xff] }
  0x8f   : > { %883 = vmatpush.msrb.mxu0 %v878_v43 }
  0x91   : > { %758 = vmatmul.bf16.gmra.mxu3 %v363_v9  ;;  %884 = vmatpush.msrb.mxu0 %v877_v14 }
  0x93   : > { %885 = vmatpush.msrb.mxu0 %v876_v15 }
  0x95   : > { %886 = vmatpush.msrb.mxu0 %v875_v16 }
  0x97   : > { %887 = vmatpush.msrb.mxu0 %v874_v17 }
  0x99   : > { %888 = vmatpush.msrb.mxu0 %v873_v20 }
  0x9b   : > { %889 = vmatpush.msrb.mxu0 %v872_v22 }
  0x9d   : > { %890 = vmatpush.msrb.mxu0 %v871_v24 }
  0x9e   : > { %585 = vmatmul.bf16.gmra.mxu1 %v1539_v27  ;;  %714 = vmatmul.bf16.gmra.mxu2 %v364_v42 }
  0x9f   : > { %891 = vmatpush.msrb.mxu0 %v870_v25 }
  0xa1   : > { %763 = vmatmul.bf16.gmra.mxu3 %v364_v42  ;;  %892 = vmatpush.msrb.mxu0 %v869_v26 }
  0xab   : > { %v1646_v23 = vpop.f32.mrf.mxu1 }
  0xad   : > { %v512_v48 = vpop.f32.mrf.mxu0 }
  0xae   : > { %590 = vmatmul.bf16.gmra.mxu1 %v1458_v47  ;;  %719 = vmatmul.bf16.gmra.mxu2 %v365_v21  ;;  %v868_v47 = vld [vmem:[%s1762_s5 + $0x18] sm:$0xff] }
  0xaf   : > { %893 = vmatpush.msrb.mxu0 %v868_v47 }
  0xb1   : > { %768 = vmatmul.bf16.gmra.mxu3 %v365_v21  ;;  %v1658_v27 = vpop.f32.mrf.mxu2  ;;  %894 = vmatpush.msrb.mxu0 %v867_v30 }
  0xb3   : > { %v1662_v29 = vpop.f32.mrf.mxu1  ;;  %895 = vmatpush.msrb.mxu0 %v866_v34 }
  0xb4   : > { %v1660_v28 = vpop.f32.mrf.mxu3 }
  0xb5   : > { %896 = vmatpush.msrb.mxu0 %v865_v35  ;;  %v514_v58 = vpop.f32.mrf.mxu0 }
  0xb9   : > { %v1678_v36 = vpop.f32.mrf.mxu2 }
  0xbb   : > { %v1682_v39 = vpop.f32.mrf.mxu1 }
  0xbc   : > { %v1680_v37 = vpop.f32.mrf.mxu3 }
  0xbd   : > { %v517_v7 = vpop.f32.mrf.mxu0 }
  0xbe   : > { %595 = vmatmul.bf16.gmra.mxu1 %v1550_v31  ;;  %724 = vmatmul.bf16.gmra.mxu2 %v366_v38 }
  0xc1   : > { %773 = vmatmul.bf16.gmra.mxu3 %v366_v38  ;;  %v1685_v40 = vpop.f32.mrf.mxu2 }
  0xc3   : > { %v1689_v44 = vpop.f32.mrf.mxu1 }
  0xc4   : > { %v1687_v41 = vpop.f32.mrf.mxu3 }
  0xc5   : > { %v519_v17 = vpop.f32.mrf.mxu0 }
  0xc9   : > { %v1691_v45 = vpop.f32.mrf.mxu2 }
  0xcb   : > { %v561_v49 = vpop.f32.mrf.mxu1 }
  0xcc   : > { %v1693_v46 = vpop.f32.mrf.mxu3 }
  0xd1   : > { %v690_v31 = vpop.f32.mrf.mxu2 }
  0xd2   : > { %v691_v53 = vadd.f32 %v690_v31, %v512_v48 }
  0xd3   : > { %v563_v56 = vpop.f32.mrf.mxu1 }
  0xd4   : > { %v739_v54 = vpop.f32.mrf.mxu3  ;;  %v785_v57 = vadd.f32 %v1698_v51, %v691_v53 }
  0xd5   : > { %v740_v55 = vadd.f32 %v739_v54, %v561_v49 }
  0xd6   : > { %v817_v61 = vmax.f32 %v785_v57, 0.0 }
  0xd7   : > { %v786_v60 = vadd.f32 %v1700_v52, %v740_v55 }
  0xd9   : > { %v818_v62 = vmax.f32 %v786_v60, 0.0  ;;  %v692_v63 = vpop.f32.mrf.mxu2 }
  0xda   : > { %v693_v1 = vadd.f32 %v692_v63, %v514_v58 }
  0xdb   : > { %v849_v0 = vmul.f32 %v818_v62, %v817_v61  ;;  %v566_v4 = vpop.f32.mrf.mxu1 }
  0xdc   : > { %v741_v2 = vpop.f32.mrf.mxu3  ;;  %v787_v59 = vadd.f32 %v1698_v51, %v693_v1 }
  0xdd   : > { %v742_v3 = vadd.f32 %v741_v2, %v563_v56  ;;  %897 = vmatmul.f32.vlgmr.msrb.gmra.mxu0 %v849_v0 }
  0xde   : > { %v819_v6 = vmax.f32 %v787_v59, 0.0 }
  0xdf   : > { %v788_v5 = vadd.f32 %v1700_v52, %v742_v3 }
  0xe1   : > { %v820_v8 = vmax.f32 %v788_v5, 0.0  ;;  %v695_v9 = vpop.f32.mrf.mxu2 }
  0xe2   : > { %v696_v11 = vadd.f32 %v695_v9, %v517_v7 }
  0xe3   : > { %v850_v10 = vmul.f32 %v820_v8, %v819_v6  ;;  %v568_v13 = vpop.f32.mrf.mxu1 }
  0xe4   : > { %v744_v42 = vpop.f32.mrf.mxu3  ;;  %v789_v43 = vadd.f32 %v1698_v51, %v696_v11 }
  0xe5   : > { %v745_v12 = vadd.f32 %v744_v42, %v566_v4  ;;  %900 = vmatmul.f32.gmra.mxu0 %v850_v10 }
  0xe6   : > { %v821_v15 = vmax.f32 %v789_v43, 0.0 }
  0xe7   : > { %v790_v14 = vadd.f32 %v1700_v52, %v745_v12 }
  0xe9   : > { %v822_v16 = vmax.f32 %v790_v14, 0.0  ;;  %v697_v18 = vpop.f32.mrf.mxu2 }
  0xea   : > { %v698_v20 = vadd.f32 %v697_v18, %v519_v17 }
  0xeb   : > { %v851_v19 = vmul.f32 %v822_v16, %v821_v15  ;;  %v571_v24 = vpop.f32.mrf.mxu1 }
  0xec   : > { %v746_v21 = vpop.f32.mrf.mxu3  ;;  %v791_v25 = vadd.f32 %v1698_v51, %v698_v20 }
  0xed   : > { %v747_v22 = vadd.f32 %v746_v21, %v568_v13  ;;  %903 = vmatmul.f32.gmra.mxu0 %v851_v19 }
  0xee   : > { %v823_v47 = vmax.f32 %v791_v25, 0.0 }
  0xef   : > { %v792_v26 = vadd.f32 %v1700_v52, %v747_v22 }
  0xf1   : > { %v824_v30 = vmax.f32 %v792_v26, 0.0  ;;  %v700_v32 = vpop.f32.mrf.mxu2 }
  0xf2   : > { %v701_v34 = vadd.f32 %v700_v32, %v1646_v23 }
  0xf3   : > { %v852_v33 = vmul.f32 %v824_v30, %v823_v47  ;;  %v573_v48 = vpop.f32.mrf.mxu1 }
  0xf4   : > { %v749_v35 = vpop.f32.mrf.mxu3  ;;  %v793_v49 = vadd.f32 %v1698_v51, %v701_v34 }
  0xf5   : > { %v750_v38 = vadd.f32 %v749_v35, %v571_v24  ;;  %906 = vmatmul.f32.gmra.mxu0 %v852_v33 }
  0xf6   : > { %v825_v31 = vmax.f32 %v793_v49, 0.0 }
  0xf7   : > { %v794_v50 = vadd.f32 %v1700_v52, %v750_v38 }
  0xf9   : > { %v826_v53 = vmax.f32 %v794_v50, 0.0  ;;  %v702_v54 = vpop.f32.mrf.mxu2 }
  0xfa   : > { %v703_v56 = vadd.f32 %v702_v54, %v1662_v29 }
  0xfb   : > { %v853_v55 = vmul.f32 %v826_v53, %v825_v31  ;;  %v576_v60 = vpop.f32.mrf.mxu1 }
  0xfc   : > { %v751_v57 = vpop.f32.mrf.mxu3  ;;  %v795_v23 = vadd.f32 %v1698_v51, %v703_v56 }
  0xfd   : > { %v752_v58 = vadd.f32 %v751_v57, %v573_v48  ;;  %909 = vmatmul.f32.gmra.mxu0 %v853_v55 }
  0xfe   : > { %v827_v62 = vmax.f32 %v795_v23, 0.0 }
  0xff   : > { %v796_v61 = vadd.f32 %v1700_v52, %v752_v58 }
 0x101   : > { %v828_v63 = vmax.f32 %v796_v61, 0.0  ;;  %v705_v0 = vpop.f32.mrf.mxu2 }
 0x102   : > { %v706_v2 = vadd.f32 %v705_v0, %v1682_v39 }
 0x103   : > { %v854_v1 = vmul.f32 %v828_v63, %v827_v62  ;;  %v578_v59 = vpop.f32.mrf.mxu1 }
 0x104   : > { %v754_v3 = vpop.f32.mrf.mxu3  ;;  %v797_v29 = vadd.f32 %v1698_v51, %v706_v2 }
 0x105   : > { %v755_v4 = vadd.f32 %v754_v3, %v576_v60  ;;  %912 = vmatmul.f32.gmra.mxu0 %v854_v1 }
 0x106   : > { %v829_v6 = vmax.f32 %v797_v29, 0.0 }
 0x107   : > { %v798_v5 = vadd.f32 %v1700_v52, %v755_v4 }
 0x109   : > { %v830_v7 = vmax.f32 %v798_v5, 0.0  ;;  %v707_v8 = vpop.f32.mrf.mxu2 }
 0x10a   : > { %v708_v10 = vadd.f32 %v707_v8, %v1689_v44 }
 0x10b   : > { %v855_v9 = vmul.f32 %v830_v7, %v829_v6  ;;  %v581_v12 = vpop.f32.mrf.mxu1 }
 0x10c   : > { %v756_v11 = vpop.f32.mrf.mxu3  ;;  %v799_v39 = vadd.f32 %v1698_v51, %v708_v10 }
 0x10d   : > { %v757_v42 = vadd.f32 %v756_v11, %v578_v59  ;;  %915 = vmatmul.f32.gmra.mxu0 %v855_v9 }
 0x10e   : > { %v831_v43 = vmax.f32 %v799_v39, 0.0 }
 0x10f   : > { %v800_v13 = vadd.f32 %v1700_v52, %v757_v42 }
 0x111   : > { %v832_v14 = vmax.f32 %v800_v13, 0.0  ;;  %v710_v15 = vpop.f32.mrf.mxu2 }
 0x112   : > { %v711_v17 = vadd.f32 %v710_v15, %v1658_v27 }
 0x113   : > { %v856_v16 = vmul.f32 %v832_v14, %v831_v43  ;;  %v583_v20 = vpop.f32.mrf.mxu1 }
 0x114   : > { %v759_v18 = vpop.f32.mrf.mxu3  ;;  %v801_v44 = vadd.f32 %v1698_v51, %v711_v17 }
 0x115   : > { %v760_v19 = vadd.f32 %v759_v18, %v581_v12  ;;  %918 = vmatmul.f32.gmra.mxu0 %v856_v16 }
 0x116   : > { %v833_v22 = vmax.f32 %v801_v44, 0.0 }
 0x117   : > { %v802_v21 = vadd.f32 %v1700_v52, %v760_v19 }
 0x119   : > { %v834_v24 = vmax.f32 %v802_v21, 0.0  ;;  %v712_v25 = vpop.f32.mrf.mxu2 }
 0x11a   : > { %v713_v47 = vadd.f32 %v712_v25, %v1678_v36 }
 0x11b   : > { %v857_v26 = vmul.f32 %v834_v24, %v833_v22  ;;  %v586_v33 = vpop.f32.mrf.mxu1 }
 0x11c   : > { %v761_v30 = vpop.f32.mrf.mxu3  ;;  %v803_v27 = vadd.f32 %v1698_v51, %v713_v47 }
 0x11d   : > { %v762_v32 = vadd.f32 %v761_v30, %v583_v20  ;;  %921 = vmatmul.f32.gmra.mxu0 %v857_v26 }
 0x11e   : > { %v835_v35 = vmax.f32 %v803_v27, 0.0 }
 0x11f   : > { %v804_v34 = vadd.f32 %v1700_v52, %v762_v32 }
 0x121   : > { %v836_v38 = vmax.f32 %v804_v34, 0.0  ;;  %v715_v48 = vpop.f32.mrf.mxu2 }
 0x122   : > { %v716_v50 = vadd.f32 %v715_v48, %v1685_v40 }
 0x123   : > { %v858_v49 = vmul.f32 %v836_v38, %v835_v35  ;;  %v588_v54 = vpop.f32.mrf.mxu1 }
 0x124   : > { %v764_v31 = vpop.f32.mrf.mxu3  ;;  %v805_v36 = vadd.f32 %v1698_v51, %v716_v50 }
 0x125   : > { %v765_v53 = vadd.f32 %v764_v31, %v586_v33  ;;  %924 = vmatmul.f32.gmra.mxu0 %v858_v49 }
 0x126   : > { %v837_v56 = vmax.f32 %v805_v36, 0.0 }
 0x127   : > { %v806_v55 = vadd.f32 %v1700_v52, %v765_v53 }
 0x129   : > { %v838_v57 = vmax.f32 %v806_v55, 0.0  ;;  %v717_v58 = vpop.f32.mrf.mxu2 }
 0x12a   : > { %v718_v23 = vadd.f32 %v717_v58, %v1691_v45 }
 0x12b   : > { %v859_v60 = vmul.f32 %v838_v57, %v837_v56  ;;  %v591_v40 = vpop.f32.mrf.mxu1 }
 0x12c   : > { %v766_v61 = vpop.f32.mrf.mxu3  ;;  %v807_v63 = vadd.f32 %v1698_v51, %v718_v23  ;;  %v979_v23 = vstv %s978_s25 }
 0x12d   : > { %v767_v62 = vadd.f32 %v766_v61, %v588_v54  ;;  %927 = vmatmul.f32.gmra.mxu0 %v859_v60 }
 0x12e   : > { %v839_v1 = vmax.f32 %v807_v63, 0.0 }
 0x12f   : > { %v808_v0 = vadd.f32 %v1700_v52, %v767_v62 }
 0x131   : > { %v840_v2 = vmax.f32 %v808_v0, 0.0  ;;  %v720_v3 = vpop.f32.mrf.mxu2 }
 0x132   : > { %v721_v59 = vadd.f32 %v720_v3, %v1660_v28 }
 0x133   : > { %v860_v4 = vmul.f32 %v840_v2, %v839_v1  ;;  %v593_v8 = vpop.f32.mrf.mxu1 }
 0x134   : > { %v769_v29 = vpop.f32.mrf.mxu3  ;;  %v809_v6 = vadd.f32 %v1698_v51, %v721_v59 }
 0x135   : > { %v770_v5 = vadd.f32 %v769_v29, %v591_v40  ;;  %930 = vmatmul.f32.gmra.mxu0 %v860_v4  ;;  %v981_v4 = vld [vmem:[%s338_s28] sm:$0x1] }
 0x136   : > { %v841_v7 = vmax.f32 %v809_v6, 0.0 }
 0x137   : > { %v810_v45 = vadd.f32 %v1700_v52, %v770_v5 }
 0x139   : > { %v842_v9 = vmax.f32 %v810_v45, 0.0  ;;  %v722_v10 = vpop.f32.mrf.mxu2 }
 0x13a   : > { %v723_v42 = vadd.f32 %v722_v10, %v1680_v37 }
 0x13b   : > { %v861_v11 = vmul.f32 %v842_v9, %v841_v7  ;;  %v596_v15 = vpop.f32.mrf.mxu1 }
 0x13c   : > { %v771_v12 = vpop.f32.mrf.mxu3  ;;  %v811_v13 = vadd.f32 %v1698_v51, %v723_v42 }
 0x13d   : > { %v772_v39 = vadd.f32 %v771_v12, %v593_v8  ;;  %933 = vmatmul.f32.gmra.mxu0 %v861_v11 }
 0x13e   : > { %v843_v43 = vmax.f32 %v811_v13, 0.0 }
 0x13f   : > { %v812_v28 = vadd.f32 %v1700_v52, %v772_v39 }
 0x141   : > { %v844_v14 = vmax.f32 %v812_v28, 0.0  ;;  %v725_v16 = vpop.f32.mrf.mxu2 }
 0x142   : > { %v726_v18 = vadd.f32 %v725_v16, %v1687_v41 }
 0x143   : > { %v862_v17 = vmul.f32 %v844_v14, %v843_v43  ;;  %v598_v26 = vpop.f32.mrf.mxu1 }
 0x144   : > { %v774_v19 = vpop.f32.mrf.mxu3  ;;  %v813_v44 = vadd.f32 %v1698_v51, %v726_v18 }
 0x145   : > { %v775_v20 = vadd.f32 %v774_v19, %v596_v15  ;;  %936 = vmatmul.f32.gmra.mxu0 %v862_v17 }
 0x146   : > { %v845_v21 = vmax.f32 %v813_v44, 0.0 }
 0x147   : > { %v814_v37 = vadd.f32 %v1700_v52, %v775_v20 }
 0x149   : > { %v846_v22 = vmax.f32 %v814_v37, 0.0  ;;  %v727_v24 = vpop.f32.mrf.mxu2 }
 0x14a   : > { %v728_v47 = vadd.f32 %v727_v24, %v1693_v46 }
 0x14b   : > { %v863_v25 = vmul.f32 %v846_v22, %v845_v21 }
 0x14c   : > { %v776_v30 = vpop.f32.mrf.mxu3  ;;  %v815_v33 = vadd.f32 %v1698_v51, %v728_v47 }
 0x14d   : > { %v777_v32 = vadd.f32 %v776_v30, %v598_v26  ;;  %939 = vmatmul.f32.gmra.mxu0 %v863_v25 }
 0x14e   : > { %v847_v27 = vmax.f32 %v815_v33, 0.0 }
 0x14f   : > { %v816_v41 = vadd.f32 %v1700_v52, %v777_v32 }
 0x151   : > { %v848_v34 = vmax.f32 %v816_v41, 0.0 }
 0x153   : > { %v864_v35 = vmul.f32 %v848_v34, %v847_v27 }
 0x155   : > { %942 = vmatmul.f32.gmra.mxu0 %v864_v35 }
 0x15a   : > { %v898_v38 = vpop.f32.mrf.mxu0 }
 0x15b   : > { %946 = vxpose.xlu0.b32.start [1/16] (narrow) %v898_v38, 8 }
 0x162   : > { %v901_v48 = vpop.f32.mrf.mxu0 }
 0x163   : > { %947 = vxpose.xlu0.b32.cont [2/16] (narrow) %v901_v48, 8 }
 0x16a   : > { %v904_v49 = vpop.f32.mrf.mxu0 }
 0x16b   : > { %948 = vxpose.xlu0.b32.cont [3/16] (narrow) %v904_v49, 8 }
 0x172   : > { %v907_v50 = vpop.f32.mrf.mxu0 }
 0x173   : > { %949 = vxpose.xlu0.b32.cont [4/16] (narrow) %v907_v50, 8 }
 0x17a   : > { %v910_v46 = vpop.f32.mrf.mxu0 }
 0x17b   : > { %950 = vxpose.xlu0.b32.cont [5/16] (narrow) %v910_v46, 8 }
 0x182   : > { %v913_v31 = vpop.f32.mrf.mxu0 }
 0x183   : > { %951 = vxpose.xlu0.b32.cont [6/16] (narrow) %v913_v31, 8 }
 0x18a   : > { %v916_v53 = vpop.f32.mrf.mxu0 }
 0x18b   : > { %952 = vxpose.xlu0.b32.cont [7/16] (narrow) %v916_v53, 8 }
 0x192   : > { %v919_v51 = vpop.f32.mrf.mxu0 }
 0x193   : > { %953 = vxpose.xlu0.b32.cont [8/16] (narrow) %v919_v51, 8 }
 0x19a   : > { %v922_v52 = vpop.f32.mrf.mxu0 }
 0x19b   : > { %954 = vxpose.xlu0.b32.cont [9/16] (narrow) %v922_v52, 8 }
 0x1a2   : > { %v925_v54 = vpop.f32.mrf.mxu0 }
 0x1a3   : > { %955 = vxpose.xlu0.b32.cont [10/16] (narrow) %v925_v54, 8 }
 0x1aa   : > { %v928_v36 = vpop.f32.mrf.mxu0 }
 0x1ab   : > { %956 = vxpose.xlu0.b32.cont [11/16] (narrow) %v928_v36, 8 }
 0x1b2   : > { %v931_v55 = vpop.f32.mrf.mxu0 }
 0x1b3   : > { %957 = vxpose.xlu0.b32.cont [12/16] (narrow) %v931_v55, 8 }
 0x1ba   : > { %v934_v56 = vpop.f32.mrf.mxu0 }
 0x1bb   : > { %958 = vxpose.xlu0.b32.cont [13/16] (narrow) %v934_v56, 8 }
 0x1c2   : > { %v937_v57 = vpop.f32.mrf.mxu0 }
 0x1c3   : > { %959 = vxpose.xlu0.b32.cont [14/16] (narrow) %v937_v57, 8 }
 0x1ca   : > { %v940_v58 = vpop.f32.mrf.mxu0 }
 0x1cb   : > { %960 = vxpose.xlu0.b32.cont [15/16] (narrow) %v940_v58, 8 }
 0x1d2   : > { %v943_v60 = vpop.f32.mrf.mxu0 }
 0x1d3   : > { %961 = vxpose.xlu0.b32.end [16/16] (narrow) %v943_v60, 8 }
 0x1ff   : > { %v962_v61 = vpop.trf.xlu0 }
 0x200   : > { %v980_v62 = vadd.f32 %v979_v23, %v962_v61 }
 0x202   : > { %v985_v63 = vand.u32 2147483647, %v980_v62  ;;  %v982_v29 = vmax.f32 %v980_v62, 0.0  ;;  %v983_v5 = vmul.f32 %v981_v4, %v980_v62 }
 0x204   : > { %v986_v40 = vsub.f32 0.0, %v985_v63  ;;  %v984_v9 = vsub.f32 %v982_v29, %v983_v5 }
 0x206   : > { %v987_v0 = vmul.f32 1.442695, %v986_v40 }
 0x208   : > { %1283 = vpow2.f32 %v987_v0 }
 0x20e   : > { %v1284_v1 = vpop.eup %1283 }
 0x20f   : > { %v989_v2 = vadd.f32 1.0, %v1284_v1  ;;  %v992_v3 = vmul.f32 -0.5, %v1284_v1  ;;  %v995_v6 = vand.u32 2147483647, %v1284_v1 }
 0x211   : > { %1285 = vlog2.f32 %v989_v2  ;;  %v993_v59 = vadd.f32 1.0, %v992_v3  ;;  %vm996_vm0 = vcmp.lt.f32.partialorder %v995_v6, 0.0004427343 }
 0x213   : > { %v994_v8 = vmul.f32 %v1284_v1, %v993_v59 }
 0x217   : > { %v1286_v45 = vpop.eup %1285 }
 0x218   : > { %v991_v7 = vmul.f32 0.6931472, %v1286_v45 }
 0x21a   : > { %v997_v10 = vsel %vm996_vm0, %v994_v8, %v991_v7 }
 0x21b   : > { %v998_v11 = vadd.f32 %v997_v10, %v984_v9 }
 0x21d   : > { %v1000_v42 = vrot.slane %v998_v11, 7 }
 0x21f   : > { %v1003_v12 = vsel %vm1002_vm1, %v980_v62, %v1000_v42 }
 0x220   : > { %1004 = vst [vmem:[%s342_s24] sm:$0x3] %v1003_v12 }
 0x221 PF: > { %s19_s29 = sadd.s32 1, %s1293_s29  }
 0x222   : > { %p16_p5 = scmp.ge.s32.totalorder %s19_s29, 4  }
 0x224   :  { %18 = sbr.rel (!%p16_p5) target bundleno = 2 (0x2), region = 88 }

</bundles_post_ra>
